<compile_context>
chip_gen: v7x
topology: tpu7x:2x2x1
jax: 0.10.0
libtpu: 0.0.40
codegen_flags: <defaults>
</compile_context>

<pallas_src>
import functools

import jax
import jax.numpy as jnp
from jax.experimental import pallas as pl
from jax.experimental.pallas import tpu as pltpu


def _cat_relu_kernel(x_ref, o_ref):
    # x_ref: (TB, D) in VMEM, o_ref: (TB, 2*D) in VMEM.
    r = jnp.maximum(x_ref[...], 0)           # relu (no zeros_like broadcast)
    D = x_ref.shape[-1]
    # relu(cat([x, x])) == cat([relu(x), relu(x)])
    o_ref[:, :D] = r
    o_ref[:, D:] = r


def _choose_row_tile(B: int, D: int, itemsize: int) -> int:
    """Largest row tile whose double-buffered in+out blocks fit a safe VMEM budget."""
    vmem_budget = 12 * 1024 * 1024            # safe under 16 MiB default scoped VMEM (v5e)
    per_row = 3 * D * itemsize                # D in + 2*D out, per row
    max_rows = max(8, vmem_budget // (2 * per_row))   # x2: double buffering
    tb = min(B, max_rows, 1024)
    if tb < B:
        tb = max(8, (tb // 8) * 8)            # sublane-multiple; ragged tail is masked
    return tb


@functools.partial(jax.jit, static_argnames=("row_tile",))
def cat_relu(x1: jax.Array, row_tile: int | None = None) -> jax.Array:
    """Implements: view(B, -1) -> cat([x, x], dim=-1) -> relu."""
    B = x1.shape[0]
    x_flat = x1.reshape(B, -1)                # the .view / .contiguous glue
    D = x_flat.shape[1]
    itemsize = x_flat.dtype.itemsize

    TB = row_tile if row_tile is not None else _choose_row_tile(B, D, itemsize)
    TB = min(TB, B)
    grid = (pl.cdiv(B, TB),)

    cost = pl.CostEstimate(
        flops=B * D,                          # the relu compares
        transcendentals=0,
        bytes_accessed=3 * B * D * itemsize,  # read D, write 2*D per row
    )

    out = pl.pallas_call(
        _cat_relu_kernel,
        out_shape=jax.ShapeDtypeStruct((B, 2 * D), x_flat.dtype),
        grid=grid,
        in_specs=[pl.BlockSpec((TB, D), lambda i: (i, 0))],
        out_specs=pl.BlockSpec((TB, 2 * D), lambda i: (i, 0)),
        compiler_params=pltpu.CompilerParams(
            dimension_semantics=("parallel",)),
        cost_estimate=cost,
    )(x_flat)
    return out
    # TODO(synk): if the consumer of this op is known, fuse relu+duplicate there
    # instead of materializing the 2x-wide output (halves HBM writeback).


if __name__ == "__main__":
    key = jax.random.PRNGKey(0)
    # Rank-3 input (as the module's forward implies), small but lane-friendly:
    # (32, 8, 16) -> flatten -> (32, 128) -> output (32, 256).
    x1 = jax.random.normal(key, (32, 8, 16), dtype=jnp.float32)

    # Force a row tile of 8 so the multi-step pipelined grid path is exercised.
    out = cat_relu(x1, row_tile=8)
    out = jax.block_until_ready(out)

    # Reference check in plain JAX.
    x_flat = x1.reshape(x1.shape[0], -1)
    ref = jnp.maximum(jnp.concatenate([x_flat, x_flat], axis=-1), 0.0)
    assert out.shape == ref.shape, (out.shape, ref.shape)
    assert jnp.allclose(out, ref), "mismatch vs reference"

    # Also run the auto-tiled path once (single full-extent block for this size).
    out2 = jax.block_until_ready(cat_relu(x1))
    assert jnp.allclose(out2, ref), "mismatch vs reference (auto tile)"

    print("KERNEL_OK")
</pallas_src>

<mosaic_0001>
module attributes {stable_mosaic.version = 11 : i64} {
  func.func @_cat_relu_kernel(%arg0: i32, %arg1: memref<8x128xf32, #tpu.memory_space<vmem>>, %arg2: memref<8x256xf32, #tpu.memory_space<vmem>>) attributes {dimension_semantics = [#tpu.dimension_semantics<parallel>], iteration_bounds = array<i64: 4>, scalar_prefetch = 0 : i64, scratch_operands = 0 : i64, tpu.core_type = #tpu.core_type<tc>, window_params = [{transform_indices = @transform_0, window_bounds = array<i64: 8, 128>}, {transform_indices = @transform_1, window_bounds = array<i64: 8, 256>}]} {
    %c0 = arith.constant 0 : index
    %c0_0 = arith.constant 0 : index
    %0 = vector.load %arg1[%c0, %c0_0] : memref<8x128xf32, #tpu.memory_space<vmem>>, vector<8x128xf32>
    %cst = arith.constant 0.000000e+00 : f32
    %1 = vector.broadcast %cst : f32 to vector<8x128xf32>
    %2 = arith.maximumf %0, %1 : vector<8x128xf32>
    %c0_1 = arith.constant 0 : index
    %c0_2 = arith.constant 0 : index
    %3 = vector.load %arg2[%c0_1, %c0_2] : memref<8x256xf32, #tpu.memory_space<vmem>>, vector<8x128xf32>
    tpu.vector_store %arg2[%c0_1, %c0_2], %2 {strides = array<i32>} : memref<8x256xf32, #tpu.memory_space<vmem>>, vector<8x128xf32>,
    %c0_3 = arith.constant 0 : index
    %c128 = arith.constant 128 : index
    %4 = vector.load %arg2[%c0_3, %c128] : memref<8x256xf32, #tpu.memory_space<vmem>>, vector<8x128xf32>
    tpu.vector_store %arg2[%c0_3, %c128], %2 {strides = array<i32>} : memref<8x256xf32, #tpu.memory_space<vmem>>, vector<8x128xf32>,
    return
  }
  func.func @transform_0(%arg0: i32) -> (i32, i32) {
    %c0_i32 = arith.constant 0 : i32
    %c0_i32_0 = arith.constant 0 : i32
    return %arg0, %c0_i32 : i32, i32
  }
  func.func @transform_1(%arg0: i32) -> (i32, i32) {
    %c0_i32 = arith.constant 0 : i32
    %c0_i32_0 = arith.constant 0 : i32
    return %arg0, %c0_i32 : i32, i32
  }
}

</mosaic_0001>

<bundles_post_ra>
// kernel: cat_relu.1
= control target key start
LH: loop header
LB: loop body
LE: loop exit
PB: predicated region body
PF: predicated region fallthrough
CT: control target
= control target key end

     0   :  { %6 = vsyncpa [#allocation3], 0  ;;  %s416_s0 = inlined_call_operand.vmem [shape: f32[32,128], index: 0, kind: input, shape index: {}]   ;;  %s417_s1 = inlined_call_operand.hbm [shape: f32[32,256], index: 1, kind: output, shape index: {}]  }
   0x1   :  { %8 = vsyncpa [#allocation3 + $0x1], 0  ;;  %s316_s6 = smov 0   ;;  %s318_s7 = smov 0  }
   0x2   :  { %s320_s8 = smov 0   ;;  %s322_s9 = smov 0  }
   0x3 LB: > { %s337_s10 = sadd.s32 4294967295, %s303_s9   ;;  %s190_s11 = sadd.s32 4294967294, %s303_s9   ;;  %s303_s9 = sphi %s322_s9, %s423_s9   ;;  %s299_s8 = sphi %s320_s8, %s422_s8   ;;  %s295_s7 = sphi %s318_s7, %s421_s7   ;;  %s291_s6 = sphi %s316_s6, %s420_s6  }
   0x4   : > { %s341_s12 = sadd.s32 1, %s303_s9   ;;  %s47_s13 = sadd.s32 1, %s299_s8 }
   0x5   : > { %s44_s14 = ssub.s32 %s303_s9, %s341_s12  ;;  %p57_p0 = scmp.ne.s32.totalorder %s299_s8, %s295_s7 }
   0x6   : > { %p45_p1 = scmp.eq.s32.totalorder %s44_s14, 0  ;;  %p58_p2 = scmp.eq.s32.totalorder %s337_s10, 3 }
   0x7   : > { %p63_p3 = scmp.ne.s32.totalorder %s295_s7, %s291_s6  ;;  %p64_p4 = scmp.eq.s32.totalorder %s190_s11, 3 }
   0x8   : > { %s352_s15 = scalar_select %p45_p1, %s299_s8, %s47_s13  }
   0x9   : > { %p354_p5 = por %p58_p2, %p57_p0  ;;  %p358_p6 = por %p64_p4, %p63_p3 }
   0xa   : > { %p193_p7 = scmp.ge.s32.totalorder %s303_s9, 1  ;;  %p89_p8 = scmp.lt.s32.totalorder %s303_s9, 5 }
   0xc   : > { %p90_p9 = pnand %p193_p7, %p89_p8 }
   0xd   : > { %s105_s18 = sand.u32 (!%p90_p9), 1, %s295_s7   ;;  %p108_p10 = scmp.lt.s32.totalorder (!%p90_p9), %s337_s10, 3 }
   0xe   : > { %93 = sbr.rel (%p90_p9) target bundleno = 42 (0x2a), region = 24  ;;  %s194_s19 = sshll.u32 (!%p90_p9), %s105_s18, 4 }
   0xf   : > { %s201_s21 = sshll.u32 (!%p90_p9), %s337_s10, 8  ;;  %s107_s23 = scalar_lea.vmem (!%p90_p9), [#allocation2], %s194_s19 }
  0x10   : > { %s131_s24 = sshll.u32 (!%p90_p9), %s107_s23, 4  ;;  %s376_s30 = scalar_lea.hbm (!%p90_p9), %s417_s1, %s201_s21  ;;  %s371_s24 = int_to_ptr.vmem [resolvable:$true] %s131_s24 }
  0x11   : > { %s117_s2 = scalar_lea.sflag (!%p90_p9), [#allocation3], %s105_s18  ;;  %s241_s3 = scalar_lea.vmem (!%p90_p9), %s371_s24, 256 }
  0x12   : > { %p242_p11 = scmp.ne.s32.totalorder (!%p90_p9), %s371_s24, %s241_s3  ;;  %s305_s4 = smov (!%p90_p9), [#allocation2]  }
  0x13   : > { %s245_s5 = sshll.u32 (!%p90_p9), %s305_s4, 4  ;;  %s246_s5 = int_to_ptr.vmem [resolvable:$false] %s245_s5 }
  0x14   : > { %p243_p12 = pnand (!%p90_p9), %p242_p11, %p354_p5  ;;  %p248_p0 = scmp.lt.s32.totalorder (!%p90_p9), %s371_s24, %s246_s5 }
  0x15   : > { %s109_s20 = scalar_select %p108_p10, %s337_s10, 3 }
  0x16   : > { %p244_p13 = pneg %p243_p12  ;;  %s247_s10 = scalar_lea.vmem %s246_s5, 512 }
  0x17   : > { %s195_s22 = sshll.u32 %s109_s20, 3  ;;  %p249_p1 = scmp.lt.s32.totalorder %s247_s10, %s241_s3 }
  0x18   : > { %s111_s27 = scalar_lea.vmem %s416_s0, %s195_s22 }
  0x19   : > { %v112_v0 = vld [vmem:[%s111_s27] sm:$0xff]  ;;  %p250_p2 = por %p249_p1, %p248_p0 }
  0x1a   : > { %v113_v1 = vmax.f32 %v112_v0, 0.0 }
  0x1b   : > { %p251_p3 = pnand %p250_p2, %p244_p13 }
  0x1c   : > { %114 = vst [vmem:[%s107_s23] sm:$0xff] %v113_v1  ;;  %115 = vst [vmem:[%s107_s23 + $0x8] sm:$0xff] %v113_v1 }
  0x1d   : > { %254 = shalt.err (!%p251_p3)
}
  0x1e   : > { %s255_s11 = scalar_lea.hbm %s376_s30, 256  ;;  %s259_s18 = scalar_lea.hbm %s417_s1, 1024 }
  0x1f   : > { %p256_p4 = scmp.ne.s32.totalorder %s376_s30, %s255_s11  ;;  %p260_p9 = scmp.lt.u32.totalorder %s376_s30, %s417_s1 }
  0x20   : > { %p261_p10 = scmp.lt.u32.totalorder %s259_s18, %s255_s11  ;;  %p263_p12 = scmp.lt.u32.totalorder %s255_s11, %s376_s30 }
  0x21   : > { %p257_p7 = pnand %p256_p4, %p354_p5 }
  0x22   : > { %p262_p11 = por %p261_p10, %p260_p9 }
  0x23   : > { %p258_p8 = pneg %p257_p7 }
  0x24   : > { %p264_p13 = por %p263_p12, %p262_p11 }
  0x26   : > { %p265_p0 = pnand %p264_p13, %p258_p8 }
  0x28   : > { %268 = shalt.err (!%p265_p0)
}
  0x29   : > { %202 = dma.vmem_to_hbm [thread:$0]  (%p354_p5), %s371_s24, 256, %s376_s30, %s117_s2  }
  0x2a PF: > { %p208_p1 = scmp.ge.s32.totalorder %s303_s9, 2  ;;  %s143_s21 = sand.u32 1, %s291_s6  }
  0x2b   : > { %s144_s22 = scalar_lea.sflag [#allocation3], %s143_s21 }
  0x2c   : > { %p205_p2 = pnand %p208_p1, %p358_p6 }
  0x2e   : > { %286 = dma.done.wait (!%p205_p2), %s144_s22, 256  }
  0x2f   : > { %288 = vsyncadd (!%p205_p2), %s144_s22, 4294967040  ;;  %p11_p3 = scmp.ge.s32.totalorder %s341_s12, 6   ;;  %s420_s6 = smov %s295_s7 }
  0x30   : > { %s421_s7 = smov %s299_s8  ;;  %s422_s8 = smov %s352_s15 }
  0x31   : > { %s423_s9 = smov %s341_s12  ;;  %13 = sbr.rel (!%p11_p3) target bundleno = 3 (0x3), region = 59 }
  0x38   :  { %149 = vsyncpa [#allocation3], 1 }
  0x39   :  { %151 = vsyncpa [#allocation3 + $0x1], 1 }

</bundles_post_ra>
